<compile_context>
chip_gen: v7x
topology: tpu7x:2x2x1
jax: 0.10.0
libtpu: 0.0.40
codegen_flags: <defaults>
</compile_context>

<pallas_src>
import math
import functools

import jax
import jax.numpy as jnp
from jax import lax
from jax.experimental import pallas as pl
from jax.experimental.pallas import tpu as pltpu


# ----------------------------- Pallas kernels ------------------------------ #

def _flash_attn_kernel(q_ref, k_ref, v_ref, o_ref, lse_ref,
                       m_sc, l_sc, acc_sc, *, kv_valid, block_k):
    """Online-softmax flash attention step for one (group, q-tile, kv-tile).

    q is pre-scaled by 1/sqrt(d) and q/k/v arrive in bf16; accumulation is f32.
    """
    kv = pl.program_id(2)

    @pl.when(kv == 0)
    def _():
        m_sc[...] = jnp.full(m_sc.shape, -jnp.inf, dtype=m_sc.dtype)
        l_sc[...] = jnp.zeros(l_sc.shape, dtype=l_sc.dtype)
        acc_sc[...] = jnp.zeros(acc_sc.shape, dtype=acc_sc.dtype)

    q = q_ref[...]                                      # (G, tq, d) bf16
    k = k_ref[...]                                      # (G, tk, d) bf16
    v = v_ref[...]                                      # (G, tk, d) bf16

    # s = q @ k^T without forming k.T: contract last dims, batch over group dim.
    s = lax.dot_general(q, k, (((2,), (2,)), ((0,), (0,))),
                        preferred_element_type=jnp.float32)       # (G, tq, tk) f32

    if kv_valid is not None:
        # Static branch: only emitted when the KV dimension was padded.
        # Finite fill value (not -inf) avoids any -inf - -inf = NaN hazard.
        col = kv * block_k + lax.broadcasted_iota(jnp.int32, s.shape, 2)
        s = jnp.where(col < kv_valid, s, -1e30)

    m_prev = m_sc[...]
    m_new = jnp.maximum(m_prev, jnp.max(s, axis=-1, keepdims=True))
    alpha = jnp.exp(m_prev - m_new)                     # rescale factor (0 at kv==0)
    p = jnp.exp(s - m_new)                              # (G, tq, tk) f32

    l_sc[...] = alpha * l_sc[...] + jnp.sum(p, axis=-1, keepdims=True)
    acc_sc[...] = alpha * acc_sc[...] + lax.dot_general(
        p.astype(v.dtype), v, (((2,), (1,)), ((0,), (0,))),
        preferred_element_type=jnp.float32)             # (G, tq, d) f32
    m_sc[...] = m_new

    @pl.when(kv == pl.num_programs(2) - 1)
    def _():
        # Exact divide: finalize runs once per q tile, and exact normalization
        # matches torch softmax and the recomputed weights (weights @ v == out).
        o_ref[...] = (acc_sc[...] / l_sc[...]).astype(o_ref.dtype)
        lse = m_sc[...] + jnp.log(l_sc[...])            # (G, tq, 1) f32
        if len(lse_ref.shape) == 2:                     # lane-dense (G, tq) layout
            lse_ref[...] = lse[..., 0]
        else:                                           # fallback (G, tq, 1) layout
            lse_ref[...] = lse


def _attn_weights_kernel(q_ref, k_ref, lse_ref, w_ref):
    """weights = exp(q@k^T - lse); fully parallel, lane-dense tk output.

    q is the same pre-scaled bf16 tensor used by the flash pass, so the scores
    (and therefore the weights) are exactly consistent with the output.
    """
    s = lax.dot_general(q_ref[...], k_ref[...], (((2,), (2,)), ((0,), (0,))),
                        preferred_element_type=jnp.float32)       # (G, tq, tk)
    lse = lse_ref[...]
    if len(lse.shape) == 2:
        lse = lse[..., None]
    w_ref[...] = jnp.exp(s - lse).astype(w_ref.dtype)


# ----------------------------- tiling helpers ------------------------------ #

def _round_up(n, m):
    return ((n + m - 1) // m) * m


def _vmem_block_bytes(G, tq, tk, d, in_bytes, out_bytes, with_weights):
    """Approximate resident VMEM for one grid step: double-buffered q/k/v/o (and
    optionally the weights block), the lse block, and the m/l/acc scratch, all
    padded to the (8, 128) sublane/lane tiling."""
    d_l = _round_up(d, 128)
    tq_s = _round_up(tq, 8)
    tk_s = _round_up(tk, 8)
    q = 2 * G * tq_s * d_l * in_bytes
    k = 2 * G * tk_s * d_l * in_bytes
    v = 2 * G * tk_s * d_l * in_bytes
    o = 2 * G * tq_s * d_l * out_bytes
    lse = 2 * G * tq_s * 128 * 4            # conservative: covers the (G,tq,1) layout
    ml = 2 * G * tq_s * 128 * 4             # m and l scratch (last dim 1 pads to 128)
    acc = G * tq_s * d_l * 4
    w = (2 * G * tq_s * _round_up(tk, 128) * out_bytes) if with_weights else 0
    return q + k + v + o + lse + ml + acc + w


def _select_tiling(BH, Lq, Lk, d, in_bytes, out_bytes, budget, vmem_cap,
                   with_weights):
    # --- q tile: up to 256 rows (fills the 256-wide MXU on v6e/v7x; on v5e the
    # larger tile still halves the number of K/V streams from HBM).
    if Lq <= 256:
        tq, lq_pad = Lq, Lq
    else:
        tq = 256
        lq_pad = _round_up(Lq, tq)

    # --- kv tile: stream the whole K/V per step when it fits the budget (fewest
    # grid steps); otherwise tile in multiples of 128 and pad+mask the tail.
    candidates = [Lk] + [c for c in (2048, 1024, 512, 384, 256, 128) if c < Lk]
    tk = 128
    for c in candidates:
        if _vmem_block_bytes(1, tq, c, d, in_bytes, out_bytes, with_weights) <= budget:
            tk = c
            break
    lk_pad = Lk if tk == Lk else _round_up(Lk, tk)

    # --- group size: as many (batch*head) slices per grid step as fits the
    # budget, preferring sizes that keep the lane-dense (G, tq) lse block legal.
    divisors = [g for g in range(BH, 0, -1) if BH % g == 0]

    def fits(g):
        return _vmem_block_bytes(g, tq, tk, d, in_bytes, out_bytes,
                                 with_weights) <= budget

    G, lse_2d = 1, (BH == 1)
    for g in divisors:
        if fits(g) and (g == BH or g % 8 == 0):
            G, lse_2d = g, True
            break
    else:
        for g in divisors:
            if fits(g):
                G, lse_2d = g, False
                break

    # --- v7x has 2 TensorCores: keep at least one "parallel" grid axis >= 2.
    if vmem_cap < (96 << 20) and BH // G == 1 and lq_pad // tq == 1 and BH > 1:
        for g in divisors:
            if g < BH and fits(g):
                G, lse_2d = g, (g % 8 == 0)
                break

    return tq, lq_pad, tk, lk_pad, G, lse_2d


# ------------------------------ pallas wrapper ----------------------------- #

def pallas_flash_attention(q, k, v, need_weights=True, compute_dtype=jnp.bfloat16):
    """q, k, v: (B*H, L, head_dim) float32.

    Returns (output (B*H, Lq, d), weights (B*H, Lq, Lk) or None).
    """
    BH, Lq, d = q.shape
    Lk = k.shape[1]
    assert v.shape[1] == Lk, "k and v must have the same sequence length"
    out_dtype = q.dtype
    scale = 1.0 / math.sqrt(d)

    # bf16 operands for the MXU; the cast happens here so HBM->VMEM DMA bytes are
    # halved too.  The 1/sqrt(d) scale is fused into the cast (one XLA fusion).
    in_bytes = jnp.dtype(compute_dtype).itemsize
    out_bytes = jnp.dtype(out_dtype).itemsize
    qc = (q * scale).astype(compute_dtype)
    kc = k.astype(compute_dtype)
    vc = v.astype(compute_dtype)

    # Generation-aware VMEM budget: 128 MiB on v5e/v6e, 64 MiB on v7x.
    try:
        vmem_cap = int(pltpu.get_tpu_info().vmem_capacity_bytes)
    except Exception:
        vmem_cap = 64 << 20                       # conservative (v7x-sized) fallback
    vmem_limit = min(vmem_cap // 2, 64 << 20)     # 64 MiB on v5e/v6e, 32 MiB on v7x
    budget = (vmem_limit * 2) // 3                # target for resident blocks

    tq, lq_pad, tk, lk_pad, G, lse_2d = _select_tiling(
        BH, Lq, Lk, d, in_bytes, out_bytes, budget, vmem_cap, need_weights)

    # Pad sequence dims to the tiles; padded keys are masked in-kernel, padded
    # query rows are sliced off afterwards.
    if lq_pad != Lq:
        qc = jnp.pad(qc, ((0, 0), (0, lq_pad - Lq), (0, 0)))
    if lk_pad != Lk:
        kc = jnp.pad(kc, ((0, 0), (0, lk_pad - Lk), (0, 0)))
        vc = jnp.pad(vc, ((0, 0), (0, lk_pad - Lk), (0, 0)))

    grid = (BH // G, lq_pad // tq, lk_pad // tk)
    kv_valid = Lk if lk_pad != Lk else None

    if lse_2d:
        lse_shape = (BH, lq_pad)
        lse_spec = pl.BlockSpec((G, tq), lambda b, i, j: (b, i))
    else:
        lse_shape = (BH, lq_pad, 1)
        lse_spec = pl.BlockSpec((G, tq, 1), lambda b, i, j: (b, i, 0))

    n_q_tiles = lq_pad // tq
    flash_cost = pl.CostEstimate(
        flops=4 * BH * lq_pad * lk_pad * d,
        transcendentals=BH * lq_pad * lk_pad,
        bytes_accessed=(in_bytes * BH * lq_pad * d
                        + 2 * in_bytes * BH * lk_pad * d * n_q_tiles  # K/V re-streamed per q tile
                        + out_bytes * BH * lq_pad * d
                        + 4 * BH * lq_pad))

    out, lse = pl.pallas_call(
        functools.partial(_flash_attn_kernel, kv_valid=kv_valid, block_k=tk),
        out_shape=(
            jax.ShapeDtypeStruct((BH, lq_pad, d), out_dtype),
            jax.ShapeDtypeStruct(lse_shape, jnp.float32),
        ),
        grid_spec=pltpu.PrefetchScalarGridSpec(
            num_scalar_prefetch=0,
            grid=grid,
            in_specs=[
                pl.BlockSpec((G, tq, d), lambda b, i, j: (b, i, 0)),
                pl.BlockSpec((G, tk, d), lambda b, i, j: (b, j, 0)),
                pl.BlockSpec((G, tk, d), lambda b, i, j: (b, j, 0)),
            ],
            out_specs=[
                pl.BlockSpec((G, tq, d), lambda b, i, j: (b, i, 0)),
                lse_spec,
            ],
            scratch_shapes=[
                pltpu.VMEM((G, tq, 1), jnp.float32),   # running max m
                pltpu.VMEM((G, tq, 1), jnp.float32),   # running sum l
                pltpu.VMEM((G, tq, d), jnp.float32),   # output accumulator
            ],
        ),
        compiler_params=pltpu.CompilerParams(
            dimension_semantics=("parallel", "parallel", "arbitrary"),
            vmem_limit_bytes=vmem_limit,
        ),
        cost_estimate=flash_cost,
    )(qc, kc, vc)

    if lq_pad != Lq:
        out = out[:, :Lq, :]

    if not need_weights:
        return out, None

    # Second pass: materialize softmax weights (O(L^2), only when requested).
    weights = pl.pallas_call(
        _attn_weights_kernel,
        out_shape=jax.ShapeDtypeStruct((BH, lq_pad, lk_pad), out_dtype),
        grid_spec=pltpu.PrefetchScalarGridSpec(
            num_scalar_prefetch=0,
            grid=grid,
            in_specs=[
                pl.BlockSpec((G, tq, d), lambda b, i, j: (b, i, 0)),
                pl.BlockSpec((G, tk, d), lambda b, i, j: (b, j, 0)),
                lse_spec,
            ],
            out_specs=pl.BlockSpec((G, tq, tk), lambda b, i, j: (b, i, j)),
        ),
        compiler_params=pltpu.CompilerParams(
            dimension_semantics=("parallel", "parallel", "parallel"),
            vmem_limit_bytes=vmem_limit,
        ),
        cost_estimate=pl.CostEstimate(
            flops=2 * BH * lq_pad * lk_pad * d,
            transcendentals=BH * lq_pad * lk_pad,
            bytes_accessed=(in_bytes * BH * (lq_pad + lk_pad) * d
                            + 4 * BH * lq_pad
                            + out_bytes * BH * lq_pad * lk_pad)),
    )(qc, kc, lse)

    if lq_pad != Lq or lk_pad != Lk:
        weights = weights[:, :Lq, :Lk]
    return out, weights


# --------------------------- parameters (glue) ----------------------------- #

def _xavier_uniform(key, out_f, in_f):
    bound = math.sqrt(6.0 / (in_f + out_f))
    return jax.random.uniform(key, (out_f, in_f), jnp.float32, -bound, bound)


def init_params(key, embed_dim, bias=True, add_bias_kv=False):
    k1, k2, k3 = jax.random.split(key, 3)
    params = {
        "qk_w": _xavier_uniform(k1, 2 * embed_dim, embed_dim),   # nn.Linear(E, 2E).weight
        "qk_b": jnp.zeros((2 * embed_dim,), jnp.float32) if bias else None,
        "v_w": _xavier_uniform(k2, embed_dim, embed_dim),        # nn.Linear(E, E).weight
        "v_b": jnp.zeros((embed_dim,), jnp.float32) if add_bias_kv else None,
        "proj_w": _xavier_uniform(k3, embed_dim, embed_dim),     # nn.Linear(E, E).weight
        "proj_b": jnp.zeros((embed_dim,), jnp.float32),
    }
    return params


# ------------------------------ forward pass ------------------------------- #

def flash_attention2_forward(params, query, key_, value, num_heads, need_weights=True):
    bsz, q_len, E = query.shape
    k_len = key_.shape[1]
    hd = E // num_heads
    assert hd * num_heads == E

    # qk = self.qk(query) -> (bsz, q_len, 2E), chunked per head into q and k.
    qk = query @ params["qk_w"].T
    if params["qk_b"] is not None:
        qk = qk + params["qk_b"]
    qk = qk.reshape(bsz, q_len, num_heads, 2 * hd)
    q = qk[..., :hd]
    k = qk[..., hd:]                      # NOTE: k is derived from `query` (as in torch code)

    # v = self.v(value) -> (bsz, k_len, H, hd)
    v = value @ params["v_w"].T
    if params["v_b"] is not None:
        v = v + params["v_b"]
    v = v.reshape(bsz, k_len, num_heads, hd)

    # (bsz, L, H, hd) -> (bsz*H, L, hd)
    q = q.transpose(0, 2, 1, 3).reshape(bsz * num_heads, q_len, hd)
    k = k.transpose(0, 2, 1, 3).reshape(bsz * num_heads, q_len, hd)
    v = v.transpose(0, 2, 1, 3).reshape(bsz * num_heads, k_len, hd)

    attn_out, attn_w = pallas_flash_attention(q, k, v, need_weights=need_weights)

    attn_out = (
        attn_out.reshape(bsz, num_heads, q_len, hd)
        .transpose(0, 2, 1, 3)
        .reshape(bsz, q_len, E)
    )
    out = attn_out @ params["proj_w"].T + params["proj_b"]
    if attn_w is not None:
        attn_w = attn_w.reshape(bsz, num_heads, q_len, -1)
    return out, attn_w


# ---------------------------------- main ----------------------------------- #

if __name__ == "__main__":
    embed_dim, num_heads = 32, 4
    bsz, seq = 2, 8

    root = jax.random.PRNGKey(0)
    kp, kq, kk, kv = jax.random.split(root, 4)

    params = init_params(kp, embed_dim, bias=True, add_bias_kv=False)
    query = jax.random.normal(kq, (bsz, seq, embed_dim), jnp.float32)
    key_in = jax.random.normal(kk, (bsz, seq, embed_dim), jnp.float32)
    value = jax.random.normal(kv, (bsz, seq, embed_dim), jnp.float32)

    out, weights = flash_attention2_forward(params, query, key_in, value, num_heads,
                                            need_weights=True)
    jax.block_until_ready(out)
    jax.block_until_ready(weights)

    assert out.shape == (bsz, seq, embed_dim)
    assert weights.shape == (bsz, num_heads, seq, seq)
    print("KERNEL_OK")
</pallas_src>

<mosaic_0001>
module attributes {stable_mosaic.version = 11 : i64} {
  func.func @_flash_attn_kernel(%arg0: i32, %arg1: i32, %arg2: i32, %arg3: memref<4x8x8xbf16, #tpu.memory_space<vmem>>, %arg4: memref<4x8x8xbf16, #tpu.memory_space<vmem>>, %arg5: memref<4x8x8xbf16, #tpu.memory_space<vmem>>, %arg6: memref<4x8x8xf32, #tpu.memory_space<vmem>>, %arg7: memref<4x8x1xf32, #tpu.memory_space<vmem>>, %arg8: memref<4x8x1xf32, #tpu.memory_space<vmem>>, %arg9: memref<4x8x1xf32, #tpu.memory_space<vmem>>, %arg10: memref<4x8x8xf32, #tpu.memory_space<vmem>>) attributes {dimension_semantics = [#tpu.dimension_semantics<parallel>, #tpu.dimension_semantics<parallel>, #tpu.dimension_semantics<arbitrary>], iteration_bounds = array<i64: 2, 1, 1>, scalar_prefetch = 0 : i64, scratch_operands = 3 : i64, tpu.core_type = #tpu.core_type<tc>, window_params = [{transform_indices = @transform_0, window_bounds = array<i64: 4, 8, 8>}, {transform_indices = @transform_1, window_bounds = array<i64: 4, 8, 8>}, {transform_indices = @transform_2, window_bounds = array<i64: 4, 8, 8>}, {transform_indices = @transform_3, window_bounds = array<i64: 4, 8, 8>}, {transform_indices = @transform_4, window_bounds = array<i64: 4, 8, 1>}]} {
    %c0_i32 = arith.constant 0 : i32
    %0 = arith.cmpi eq, %arg2, %c0_i32 : i32
    %1 = arith.extui %0 : i1 to i32
    %c0_i32_0 = arith.constant 0 : i32
    %2 = arith.cmpi ne, %1, %c0_i32_0 : i32
    scf.if %2 {
      %cst_32 = arith.constant 0xFF800000 : f32
      %33 = vector.broadcast %cst_32 : f32 to vector<4x8x1xf32>
      %c0_33 = arith.constant 0 : index
      %c0_34 = arith.constant 0 : index
      %c0_35 = arith.constant 0 : index
      %34 = vector.load %arg8[%c0_33, %c0_34, %c0_35] : memref<4x8x1xf32, #tpu.memory_space<vmem>>, vector<4x8x1xf32>
      tpu.vector_store %arg8[%c0_33, %c0_34, %c0_35], %33 {strides = array<i32>} : memref<4x8x1xf32, #tpu.memory_space<vmem>>, vector<4x8x1xf32>,
      %cst_36 = arith.constant 0.000000e+00 : f32
      %35 = vector.broadcast %cst_36 : f32 to vector<4x8x1xf32>
      %c0_37 = arith.constant 0 : index
      %c0_38 = arith.constant 0 : index
      %c0_39 = arith.constant 0 : index
      %36 = vector.load %arg9[%c0_37, %c0_38, %c0_39] : memref<4x8x1xf32, #tpu.memory_space<vmem>>, vector<4x8x1xf32>
      tpu.vector_store %arg9[%c0_37, %c0_38, %c0_39], %35 {strides = array<i32>} : memref<4x8x1xf32, #tpu.memory_space<vmem>>, vector<4x8x1xf32>,
      %cst_40 = arith.constant 0.000000e+00 : f32
      %37 = vector.broadcast %cst_40 : f32 to vector<4x8x8xf32>
      %c0_41 = arith.constant 0 : index
      %c0_42 = arith.constant 0 : index
      %c0_43 = arith.constant 0 : index
      %38 = vector.load %arg10[%c0_41, %c0_42, %c0_43] : memref<4x8x8xf32, #tpu.memory_space<vmem>>, vector<4x8x8xf32>
      tpu.vector_store %arg10[%c0_41, %c0_42, %c0_43], %37 {strides = array<i32>} : memref<4x8x8xf32, #tpu.memory_space<vmem>>, vector<4x8x8xf32>,
    } else {
    }
    %c0 = arith.constant 0 : index
    %c0_1 = arith.constant 0 : index
    %c0_2 = arith.constant 0 : index
    %3 = vector.load %arg3[%c0, %c0_1, %c0_2] : memref<4x8x8xbf16, #tpu.memory_space<vmem>>, vector<4x8x8xbf16>
    %c0_3 = arith.constant 0 : index
    %c0_4 = arith.constant 0 : index
    %c0_5 = arith.constant 0 : index
    %4 = vector.load %arg4[%c0_3, %c0_4, %c0_5] : memref<4x8x8xbf16, #tpu.memory_space<vmem>>, vector<4x8x8xbf16>
    %c0_6 = arith.constant 0 : index
    %c0_7 = arith.constant 0 : index
    %c0_8 = arith.constant 0 : index
    %5 = vector.load %arg5[%c0_6, %c0_7, %c0_8] : memref<4x8x8xbf16, #tpu.memory_space<vmem>>, vector<4x8x8xbf16>
    %cst = arith.constant dense<0.000000e+00> : vector<4x8x8xf32>
    %6 = tpu.matmul %3, %4, %cst {dimension_numbers = #tpu.dot_dimension_numbers<[2], [2], [1], [1], [0, 0, 0, 1, 1, 1], [0], [0]>} : vector<4x8x8xbf16>, vector<4x8x8xbf16>, vector<4x8x8xf32> -> vector<4x8x8xf32>
    %c0_9 = arith.constant 0 : index
    %c0_10 = arith.constant 0 : index
    %c0_11 = arith.constant 0 : index
    %7 = vector.load %arg8[%c0_9, %c0_10, %c0_11] : memref<4x8x1xf32, #tpu.memory_space<vmem>>, vector<4x8x1xf32>
    %cst_12 = arith.constant dense<0xFF800000> : vector<4x8xf32>
    %8 = vector.multi_reduction <maximumf>, %6, %cst_12 [2] : vector<4x8x8xf32> to vector<4x8xf32>
    %9 = vector.shape_cast %8 : vector<4x8xf32> to vector<4x8x1xf32>
    %10 = arith.maximumf %7, %9 : vector<4x8x1xf32>
    %11 = arith.subf %7, %10 : vector<4x8x1xf32>
    %12 = math.exp %11 : vector<4x8x1xf32>
    %13 = vector.broadcast %10 : vector<4x8x1xf32> to vector<4x8x8xf32>
    %14 = arith.subf %6, %13 : vector<4x8x8xf32>
    %15 = math.exp %14 : vector<4x8x8xf32>
    %c0_13 = arith.constant 0 : index
    %c0_14 = arith.constant 0 : index
    %c0_15 = arith.constant 0 : index
    %16 = vector.load %arg9[%c0_13, %c0_14, %c0_15] : memref<4x8x1xf32, #tpu.memory_space<vmem>>, vector<4x8x1xf32>
    %17 = arith.mulf %12, %16 : vector<4x8x1xf32>
    %cst_16 = arith.constant dense<0.000000e+00> : vector<4x8xf32>
    %18 = vector.multi_reduction <add>, %15, %cst_16 [2] : vector<4x8x8xf32> to vector<4x8xf32>
    %19 = vector.shape_cast %18 : vector<4x8xf32> to vector<4x8x1xf32>
    %20 = arith.addf %17, %19 : vector<4x8x1xf32>
    %c0_17 = arith.constant 0 : index
    %c0_18 = arith.constant 0 : index
    %c0_19 = arith.constant 0 : index
    %21 = vector.load %arg9[%c0_17, %c0_18, %c0_19] : memref<4x8x1xf32, #tpu.memory_space<vmem>>, vector<4x8x1xf32>
    tpu.vector_store %arg9[%c0_17, %c0_18, %c0_19], %20 {strides = array<i32>} : memref<4x8x1xf32, #tpu.memory_space<vmem>>, vector<4x8x1xf32>,
    %c0_20 = arith.constant 0 : index
    %c0_21 = arith.constant 0 : index
    %c0_22 = arith.constant 0 : index
    %22 = vector.load %arg10[%c0_20, %c0_21, %c0_22] : memref<4x8x8xf32, #tpu.memory_space<vmem>>, vector<4x8x8xf32>
    %23 = vector.broadcast %12 : vector<4x8x1xf32> to vector<4x8x8xf32>
    %24 = arith.mulf %23, %22 : vector<4x8x8xf32>
    %25 = arith.truncf %15 : vector<4x8x8xf32> to vector<4x8x8xbf16>
    %cst_23 = arith.constant dense<0.000000e+00> : vector<4x8x8xf32>
    %26 = tpu.matmul %25, %5, %cst_23 {dimension_numbers = #tpu.dot_dimension_numbers<[2], [1], [1], [2], [0, 0, 0, 1, 1, 2], [0], [0]>} : vector<4x8x8xbf16>, vector<4x8x8xbf16>, vector<4x8x8xf32> -> vector<4x8x8xf32>
    %27 = arith.addf %24, %26 : vector<4x8x8xf32>
    %c0_24 = arith.constant 0 : index
    %c0_25 = arith.constant 0 : index
    %c0_26 = arith.constant 0 : index
    %28 = vector.load %arg10[%c0_24, %c0_25, %c0_26] : memref<4x8x8xf32, #tpu.memory_space<vmem>>, vector<4x8x8xf32>
    tpu.vector_store %arg10[%c0_24, %c0_25, %c0_26], %27 {strides = array<i32>} : memref<4x8x8xf32, #tpu.memory_space<vmem>>, vector<4x8x8xf32>,
    %c0_27 = arith.constant 0 : index
    %c0_28 = arith.constant 0 : index
    %c0_29 = arith.constant 0 : index
    %29 = vector.load %arg8[%c0_27, %c0_28, %c0_29] : memref<4x8x1xf32, #tpu.memory_space<vmem>>, vector<4x8x1xf32>
    tpu.vector_store %arg8[%c0_27, %c0_28, %c0_29], %10 {strides = array<i32>} : memref<4x8x1xf32, #tpu.memory_space<vmem>>, vector<4x8x1xf32>,
    %c0_i32_30 = arith.constant 0 : i32
    %30 = arith.cmpi eq, %arg2, %c0_i32_30 : i32
    %31 = arith.extui %30 : i1 to i32
    %c0_i32_31 = arith.constant 0 : i32
    %32 = arith.cmpi ne, %31, %c0_i32_31 : i32
    scf.if %32 {
      %c0_32 = arith.constant 0 : index
      %c0_33 = arith.constant 0 : index
      %c0_34 = arith.constant 0 : index
      %33 = vector.load %arg10[%c0_32, %c0_33, %c0_34] : memref<4x8x8xf32, #tpu.memory_space<vmem>>, vector<4x8x8xf32>
      %c0_35 = arith.constant 0 : index
      %c0_36 = arith.constant 0 : index
      %c0_37 = arith.constant 0 : index
      %34 = vector.load %arg9[%c0_35, %c0_36, %c0_37] : memref<4x8x1xf32, #tpu.memory_space<vmem>>, vector<4x8x1xf32>
      %35 = vector.broadcast %34 : vector<4x8x1xf32> to vector<4x8x8xf32>
      %36 = arith.divf %33, %35 : vector<4x8x8xf32>
      %c0_38 = arith.constant 0 : index
      %c0_39 = arith.constant 0 : index
      %c0_40 = arith.constant 0 : index
      %37 = vector.load %arg6[%c0_38, %c0_39, %c0_40] : memref<4x8x8xf32, #tpu.memory_space<vmem>>, vector<4x8x8xf32>
      tpu.vector_store %arg6[%c0_38, %c0_39, %c0_40], %36 {strides = array<i32>} : memref<4x8x8xf32, #tpu.memory_space<vmem>>, vector<4x8x8xf32>,
      %c0_41 = arith.constant 0 : index
      %c0_42 = arith.constant 0 : index
      %c0_43 = arith.constant 0 : index
      %38 = vector.load %arg8[%c0_41, %c0_42, %c0_43] : memref<4x8x1xf32, #tpu.memory_space<vmem>>, vector<4x8x1xf32>
      %c0_44 = arith.constant 0 : index
      %c0_45 = arith.constant 0 : index
      %c0_46 = arith.constant 0 : index
      %39 = vector.load %arg9[%c0_44, %c0_45, %c0_46] : memref<4x8x1xf32, #tpu.memory_space<vmem>>, vector<4x8x1xf32>
      %40 = math.log %39 : vector<4x8x1xf32>
      %41 = arith.addf %38, %40 : vector<4x8x1xf32>
      %c0_47 = arith.constant 0 : index
      %c0_48 = arith.constant 0 : index
      %c0_49 = arith.constant 0 : index
      %42 = vector.load %arg7[%c0_47, %c0_48, %c0_49] : memref<4x8x1xf32, #tpu.memory_space<vmem>>, vector<4x8x1xf32>
      tpu.vector_store %arg7[%c0_47, %c0_48, %c0_49], %41 {strides = array<i32>} : memref<4x8x1xf32, #tpu.memory_space<vmem>>, vector<4x8x1xf32>,
    } else {
    }
    return
  }
  func.func @transform_0(%arg0: i32, %arg1: i32, %arg2: i32) -> (i32, i32, i32) {
    %c0_i32 = arith.constant 0 : i32
    %c0_i32_0 = arith.constant 0 : i32
    return %arg0, %arg1, %c0_i32 : i32, i32, i32
  }
  func.func @transform_1(%arg0: i32, %arg1: i32, %arg2: i32) -> (i32, i32, i32) {
    %c0_i32 = arith.constant 0 : i32
    %c0_i32_0 = arith.constant 0 : i32
    return %arg0, %arg2, %c0_i32 : i32, i32, i32
  }
  func.func @transform_2(%arg0: i32, %arg1: i32, %arg2: i32) -> (i32, i32, i32) {
    %c0_i32 = arith.constant 0 : i32
    %c0_i32_0 = arith.constant 0 : i32
    return %arg0, %arg2, %c0_i32 : i32, i32, i32
  }
  func.func @transform_3(%arg0: i32, %arg1: i32, %arg2: i32) -> (i32, i32, i32) {
    %c0_i32 = arith.constant 0 : i32
    %c0_i32_0 = arith.constant 0 : i32
    return %arg0, %arg1, %c0_i32 : i32, i32, i32
  }
  func.func @transform_4(%arg0: i32, %arg1: i32, %arg2: i32) -> (i32, i32, i32) {
    %c0_i32 = arith.constant 0 : i32
    %c0_i32_0 = arith.constant 0 : i32
    return %arg0, %arg1, %c0_i32 : i32, i32, i32
  }
}

</mosaic_0001>

<bundles_post_ra>
// kernel: tpu_custom_call.1
= control target key start
LH: loop header
LB: loop body
LE: loop exit
PB: predicated region body
PF: predicated region fallthrough
CT: control target
= control target key end

     0   :  { %s2017_s0 = inlined_call_operand.hbm [shape: bf16[8,8,8], index: 0, kind: input, shape index: {}]   ;;  %s2018_s1 = inlined_call_operand.hbm [shape: bf16[8,8,8], index: 1, kind: input, shape index: {}]   ;;  %s2019_s2 = inlined_call_operand.hbm [shape: bf16[8,8,8], index: 2, kind: input, shape index: {}]   ;;  %s2020_s3 = inlined_call_operand.hbm [shape: f32[8,8,8], index: 3, kind: output, shape index: {0}]   ;;  %s2021_s4 = inlined_call_operand.vmem [shape: f32[8,8,1], index: 4, kind: output, shape index: {1}]  }
   0x1   :  { %2033 = sst [smem:[#allocation19_spill]] %s2018_s1 }
   0x2   :  { %10 = vsyncpa [#allocation6], 0 }
   0x3   :  { %12 = vsyncpa [#allocation6 + $0x1], 0 }
   0x4   :  { %13 = vsyncpa [#allocation9], 0 }
   0x5   :  { %15 = vsyncpa [#allocation9 + $0x1], 0 }
   0x6   :  { %16 = vsyncpa [#allocation7], 0 }
   0x7   :  { %18 = vsyncpa [#allocation7 + $0x1], 0  ;;  %s1578_s15 = smov 0   ;;  %s1580_s16 = smov 0  }
   0x8   :  { %s1582_s17 = smov 0   ;;  %s1584_s18 = smov 0  }
   0x9   :  { %s1586_s19 = smov 0   ;;  %s1588_s20 = smov 0  }
   0xa LB: > { %2034 = sst [smem:[#allocation15_spill]] %s1535_s19  ;;  %s1609_s21 = sadd.s32 4294967295, %s1539_s20   ;;  %s1539_s20 = sphi %s1588_s20, %s24_s20   ;;  %s1535_s19 = sphi %s1586_s19, %s2059_s19   ;;  %s1531_s18 = sphi %s1584_s18, %s2058_s18   ;;  %s1527_s17 = sphi %s1582_s17, %s2062_s17   ;;  %s1523_s16 = sphi %s1580_s16, %s2061_s16   ;;  %s1519_s15 = sphi %s1578_s15, %s2060_s15  }
   0xb   : > { %2035 = sst [smem:[#allocation16_spill]] %s1539_s20  ;;  %s1149_s22 = sadd.s32 4294967294, %s1539_s20  }
   0xc   : > { %s43_s23 = sadd.s32 1, %s1535_s19  ;;  %s52_s24 = sadd.s32 1, %s1527_s17 }
   0xd   : > { %p45_p0 = scmp.ge.s32.totalorder %s43_s23, 2  ;;  %p59_p1 = scmp.ne.s32.totalorder %s1527_s17, %s1523_s16 }
   0xe   : > { %p60_p2 = scmp.eq.s32.totalorder %s1539_s20, 0  ;;  %p65_p3 = scmp.ne.s32.totalorder %s1523_s16, %s1519_s15 }
   0xf   : > { %s2064_s23 = smov (%p45_p0, %s43_s23), 0  ;;  %p66_p5 = scmp.eq.s32.totalorder %s1609_s21, 0 }
  0x10   : > { %2036 = sst [smem:[#allocation17_spill]] %s2064_s23  ;;  %p1621_p4 = por %p60_p2, %p59_p1 }
  0x11   : > { %s47_s26 = ssub.s32 %s1535_s19, %s2064_s23  ;;  %p147_p6 = scmp.eq.s32.totalorder %s1609_s21, 1 }
  0x12   : > { %p50_p7 = scmp.eq.s32.totalorder %s47_s26, 0  ;;  %p1629_p8 = por %p66_p5, %p65_p3 }
  0x13   : > { %p1633_p9 = por %p147_p6, %p59_p1  ;;  %p153_p10 = scmp.eq.s32.totalorder %s1149_s22, 1 }
  0x14   : > { %s2038_s27 = scalar_select %p1629_p8, 1, 0 }
  0x15   : > { %s2039_s28 = scalar_select %p1633_p9, 1, 0 }
  0x16   : > { %s1638_s29 = scalar_select %p50_p7, %s1527_s17, %s52_s24  }
  0x17   : > { %p1640_p11 = por %p153_p10, %p65_p3  ;;  %p1271_p13 = scmp.lt.s32.totalorder %s1539_s20, 2 }
  0x18   : > { %2040 = sst [smem:[#allocation18_spill]] %s1638_s29  ;;  %s2022_s5 = sand.u32 1, %s1527_s17  }
  0x19   : > { %s2041_s30 = scalar_select %p1640_p11, 1, 0 }
  0x1a   : > { %s1649_s6 = sshll.u32 %s2022_s5, 4  ;;  %s1652_s7 = sshll.u32 %s1535_s19, 8 }
  0x1b   : > { %p1656_p0 = pnand %p1271_p13, %p1621_p4  ;;  %s223_s9 = sand.u32 1, %s1539_s20  }
  0x1c   : > { %s2043_s1 = sld [smem:[#allocation19_spill]]  ;;  %s227_s13 = scalar_lea.vmem [#allocation8], %s1649_s6 }
  0x1d   : > { %s235_s14 = sshll.u32 %s227_s13, 4  ;;  %s1672_s22 = scalar_lea.sflag [#allocation9], %s223_s9  ;;  %s1669_s14 = int_to_ptr.vmem [resolvable:$true] %s235_s14 }
  0x1e   : > { %p1678_p4 = pneg %p1656_p0 }
  0x22   : > { %s1665_s12 = scalar_lea.hbm %s2043_s1, %s1652_s7  ;;  %s1368_s11 = scalar_lea.hbm %s2043_s1, 512 }
  0x23   : > { %s1363_s24 = scalar_lea.hbm %s1665_s12, 256  ;;  %p1369_p7 = scmp.lt.u32.totalorder %s1665_s12, %s2043_s1 }
  0x24   : > { %p1364_p3 = scmp.ne.s32.totalorder %s1665_s12, %s1363_s24  ;;  %p1370_p10 = scmp.lt.u32.totalorder %s1368_s11, %s1363_s24 }
  0x25   : > { %p1372_p12 = scmp.lt.u32.totalorder %s1363_s24, %s1665_s12 }
  0x26   : > { %p1366_p5 = pnand %p1678_p4, %p1364_p3  ;;  %p1371_p13 = por %p1370_p10, %p1369_p7 }
  0x28   : > { %p1367_p6 = pneg %p1366_p5  ;;  %p1373_p1 = por %p1372_p12, %p1371_p13 }
  0x2a   : > { %p1374_p2 = pnand %p1373_p1, %p1367_p6 }
  0x2c   : > { %1377 = shalt.err (!%p1374_p2)
}
  0x2d   : > { %s1378_s9 = scalar_lea.vmem %s1669_s14, 256  ;;  %s1541_s26 = smov [#allocation8]  }
  0x2e   : > { %p1379_p3 = scmp.ne.s32.totalorder %s1669_s14, %s1378_s9  ;;  %s1383_s10 = sshll.u32 %s1541_s26, 4  ;;  %s1384_s10 = int_to_ptr.vmem [resolvable:$false] %s1383_s10 }
  0x2f   : > { %s1385_s5 = scalar_lea.vmem %s1384_s10, 512  ;;  %p1386_p9 = scmp.lt.s32.totalorder %s1669_s14, %s1384_s10 }
  0x30   : > { %p1381_p5 = pnand %p1379_p3, %p1678_p4  ;;  %p1387_p8 = scmp.lt.s32.totalorder %s1385_s5, %s1378_s9 }
  0x32   : > { %p1382_p11 = pneg %p1381_p5  ;;  %p1388_p7 = por %p1387_p8, %p1386_p9 }
  0x34   : > { %p1389_p10 = pnand %p1388_p7, %p1382_p11 }
  0x36   : > { %1392 = shalt.err (!%p1389_p10)
}
  0x37   : > { %s2025_s24 = smov 64   ;;  %s2027_s11 = smov 4  }
  0x38   : > { %1263 = dma.hbm_to_vmem [thread:$0]  (!%p1656_p0), %s1665_s12, 256, %s1669_s14, %s1672_s22, %s2025_s24, %s2025_s24, %s2027_s11  }
  0x39   : > { %p2045_p8 = scmp.lt.s32.totalorder %s1539_s20, 3  ;;  %p2046_p9 = scmp.ge.s32.totalorder %s1539_s20, 1 }
  0x3a   : > { %s1717_s10 = scalar_lea.hbm %s2017_s0, %s1652_s7  ;;  %s205_s5 = scalar_lea.vmem [#allocation5], %s1649_s6 }
  0x3b   : > { %p1709_p11 = pnand %p2046_p9, %p2045_p8  ;;  %s213_s1 = sshll.u32 %s205_s5, 4  ;;  %s1720_s1 = int_to_ptr.vmem [resolvable:$true] %s213_s1 }
  0x3c   : > { %s1726_s24 = scalar_lea.hbm %s2019_s2, %s1652_s7  ;;  %s2048_s11 = sand.u32 1, %s1527_s17  }
  0x3d   : > { %s2047_s13 = scalar_select %p1709_p11, 1, 0 }
  0x3e   : > { %s1730_s23 = scalar_lea.sflag [#allocation6], %s2048_s11  ;;  %s1393_s19 = scalar_lea.hbm %s1717_s10, 256 }
  0x3f   : > { %p1394_p12 = scmp.ne.s32.totalorder %s1717_s10, %s1393_s19  ;;  %s1398_s29 = scalar_lea.hbm %s2017_s0, 512 }
  0x40   : > { %p1399_p6 = scmp.lt.u32.totalorder %s1717_s10, %s2017_s0  ;;  %p1400_p13 = scmp.lt.u32.totalorder %s1398_s29, %s1393_s19 }
  0x41   : > { %p1396_p1 = pnand %p1394_p12, %p1678_p4  ;;  %p1402_p5 = scmp.lt.u32.totalorder %s1393_s19, %s1717_s10 }
  0x42   : > { %p1401_p3 = por %p1400_p13, %p1399_p6 }
  0x43   : > { %p1397_p2 = pneg %p1396_p1 }
  0x44   : > { %p1403_p7 = por %p1402_p5, %p1401_p3 }
  0x46   : > { %p1404_p10 = pnand %p1403_p7, %p1397_p2 }
  0x48   : > { %1407 = shalt.err (!%p1404_p10)
}
  0x49   : > { %s1408_s7 = scalar_lea.vmem %s1720_s1, 256  ;;  %s1544_s11 = smov [#allocation5]  }
  0x4a   : > { %p1409_p8 = scmp.ne.s32.totalorder %s1720_s1, %s1408_s7  ;;  %s1413_s12 = sshll.u32 %s1544_s11, 4  ;;  %s1414_s12 = int_to_ptr.vmem [resolvable:$false] %s1413_s12 }
  0x4b   : > { %s1415_s20 = scalar_lea.vmem %s1414_s12, 512  ;;  %p1416_p1 = scmp.lt.s32.totalorder %s1720_s1, %s1414_s12 }
  0x4c   : > { %p1411_p9 = pnand %p1409_p8, %p1678_p4  ;;  %p1417_p11 = scmp.lt.s32.totalorder %s1415_s20, %s1408_s7 }
  0x4e   : > { %p1412_p12 = pneg %p1411_p9  ;;  %p1418_p6 = por %p1417_p11, %p1416_p1 }
  0x50   : > { %p1419_p13 = pnand %p1418_p6, %p1412_p12 }
  0x52   : > { %1422 = shalt.err (!%p1419_p13)
}
  0x53   : > { %s2049_s19 = smov 4   ;;  %s2050_s29 = smov 64  }
  0x54   : > { %1260 = dma.hbm_to_vmem [thread:$0]  (!%p1656_p0), %s1717_s10, 256, %s1720_s1, %s1730_s23, %s2050_s29, %s2050_s29, %s2049_s19  }
  0x55   : > { %s249_s14 = scalar_lea.vmem [#allocation10], %s1649_s6  ;;  %s1423_s26 = scalar_lea.hbm %s1726_s24, 256 }
  0x56   : > { %s257_s9 = sshll.u32 %s249_s14, 4  ;;  %p1424_p11 = scmp.ne.s32.totalorder %s1726_s24, %s1423_s26  ;;  %s1758_s9 = int_to_ptr.vmem [resolvable:$true] %s257_s9 }
  0x57   : > { %s1428_s11 = scalar_lea.hbm %s2019_s2, 512  ;;  %p1429_p5 = scmp.lt.u32.totalorder %s1726_s24, %s2019_s2 }
  0x58   : > { %p1426_p2 = pnand %p1424_p11, %p1678_p4  ;;  %p1430_p7 = scmp.lt.u32.totalorder %s1428_s11, %s1423_s26 }
  0x59   : > { %p1432_p8 = scmp.lt.u32.totalorder %s1423_s26, %s1726_s24 }
  0x5a   : > { %p1427_p3 = pneg %p1426_p2  ;;  %p1431_p10 = por %p1430_p7, %p1429_p5 }
  0x5c   : > { %p1433_p9 = por %p1432_p8, %p1431_p10 }
  0x5e   : > { %p1434_p12 = pnand %p1433_p9, %p1427_p3 }
  0x60   : > { %1437 = shalt.err (!%p1434_p12)
}
  0x61   : > { %s1438_s1 = scalar_lea.vmem %s1758_s9, 256  ;;  %s1545_s23 = smov [#allocation10]  }
  0x62   : > { %p1439_p1 = scmp.ne.s32.totalorder %s1758_s9, %s1438_s1  ;;  %s1443_s6 = sshll.u32 %s1545_s23, 4  ;;  %s1444_s6 = int_to_ptr.vmem [resolvable:$false] %s1443_s6 }
  0x63   : > { %s1445_s10 = scalar_lea.vmem %s1444_s6, 512  ;;  %p1446_p11 = scmp.lt.s32.totalorder %s1758_s9, %s1444_s6 }
  0x64   : > { %p1441_p6 = pnand %p1439_p1, %p1678_p4  ;;  %p1447_p2 = scmp.lt.s32.totalorder %s1445_s10, %s1438_s1 }
  0x66   : > { %p1442_p13 = pneg %p1441_p6  ;;  %p1448_p5 = por %p1447_p2, %p1446_p11 }
  0x68   : > { %p1449_p7 = pnand %p1448_p5, %p1442_p13 }
  0x6a   : > { %1452 = shalt.err (!%p1449_p7)
}
  0x6b   : > { %1266 = dma.hbm_to_vmem [thread:$0]  (!%p1656_p0), %s1726_s24, 256, %s1758_s9, %s1672_s22, %s2050_s29, %s2050_s29, %s2049_s19  }
  0x6c   : > { %p2051_p4 = scmp.ne.s32.totalorder %s2047_s13, 0 }
  0x6d   : > { %s1788_s25 = sand.u32 (!%p2051_p4), 1, %s1523_s16   ;;  %p2052_p3 = scmp.ne.s32.totalorder (!%p2051_p4), %s2038_s27, 0 }
  0x6e   : > { %269 = sbr.rel (%p2051_p4) target bundleno = 952 (0x3b8), region = 32  ;;  %s1791_s14 = sshll.u32 (!%p2051_p4), %s1788_s25, 4 }
  0x6f   : > { %s272_s8 = scalar_lea.sflag (!%p2051_p4), [#allocation6], %s1788_s25  ;;  %s1795_s26 = scalar_lea.vmem (!%p2051_p4), [#allocation5], %s1791_s14 }
  0x75   : > { %1506 = dma.done.wait (%p2052_p3), %s272_s8, 256  }
  0x76   : > { %1508 = vsyncadd (%p2052_p3), %s272_s8, 4294967040  ;;  %s280_s22 = sand.u32 1, %s1609_s21   ;;  %s284_s13 = scalar_lea.vmem [#allocation8], %s1791_s14 }
  0x77   : > { %s281_s24 = scalar_lea.sflag [#allocation9], %s280_s22 }
  0x78   : > { %1510 = dma.done.wait (%p2052_p3), %s281_s24, 512  }
  0x79   : > { %1512 = vsyncadd (%p2052_p3), %s281_s24, 4294966784  ;;  %vm363_vm0 = vcmask 64512   ;;  %v1546_v0 = vmov 0.0   ;;  %vm1547_vm1 = vmmov 0   ;;  %v372_v1 = vld [vmem:[%s284_s13] sm:$0xf] }
  0x7a   : > { %1201 = vmatprep.subr.bf16.mxu0 %v1546_v0  ;;  %364 = vst.msk [vmem:[#allocation4] sm:$0xff] %vm363_vm0, %v1546_v0  ;;  %365 = vst.msk [vmem:[#allocation4 + $0x8] sm:$0xff] %vm363_vm0, %v1546_v0  ;;  %1207 = vmatprep.subr.bf16.mxu1 %v1546_v0  ;;  %v373_v2 = vld [vmem:[%s284_s13 + $0x4] sm:$0xf]  ;;  %v385_v3 = vsel %vm363_vm0, %v372_v1, 0  ;;  %vm354_vm2 = vcmask 7168  }
  0x7b   : > { %366 = vst.msk [vmem:[#allocation4 + $0x10] sm:$0xff] %vm363_vm0, %v1546_v0  ;;  %367 = vst.msk [vmem:[#allocation4 + $0x18] sm:$0xff] %vm363_vm0, %v1546_v0  ;;  %1203 = vmatprep.mubr.msk.bf16.mxu0 %vm1547_vm1, %v1546_v0  ;;  %1209 = vmatprep.mubr.msk.bf16.mxu1 %vm1547_vm1, %v1546_v0  ;;  %v431_v4 = vsel %vm363_vm0, %v373_v2, 0  ;;  %v374_v5 = vld [vmem:[%s284_s13 + $0x8] sm:$0xf]  ;;  %v1548_v13 = vmov -inf  }
  0x7c   : > { %1202 = vmatpush3.bf16.xpose.msra.mxu0 %v385_v3  ;;  %1208 = vmatpush3.bf16.xpose.msra.mxu1 %v431_v4  ;;  %v375_v6 = vld [vmem:[%s284_s13 + $0xc] sm:$0xf]  ;;  %v368_v7 = vld [vmem:[%s1795_s26] sm:$0xf]  ;;  %v369_v8 = vld [vmem:[%s1795_s26 + $0x4] sm:$0xf] }
  0x7d   : > { %1213 = vmatprep.subr.bf16.mxu0 %v1546_v0  ;;  %1219 = vmatprep.subr.bf16.mxu1 %v1546_v0  ;;  %v477_v9 = vsel %vm363_vm0, %v374_v5, 0  ;;  %v523_v10 = vsel %vm363_vm0, %v375_v6, 0  ;;  %v370_v11 = vld [vmem:[%s1795_s26 + $0x8] sm:$0xf]  ;;  %v371_v12 = vld [vmem:[%s1795_s26 + $0xc] sm:$0xf] }
  0x7e   : > { %355 = vst.msk [vmem:[#allocation2] sm:$0xff] %vm354_vm2, %v1548_v13  ;;  %356 = vst.msk [vmem:[#allocation2 + $0x8] sm:$0xff] %vm354_vm2, %v1548_v13  ;;  %v1549_v34 = vmov 0   ;;  %s293_s21 = scalar_lea.vmem [#allocation10], %s1791_s14  ;;  %vm693_vm3 = vcmask 1043456   ;;  %s1166_s27 = sshll.u32 %s1531_s18, 2 }
  0x7f   : > { %357 = vst.msk [vmem:[#allocation2 + $0x10] sm:$0xff] %vm354_vm2, %v1548_v13  ;;  %358 = vst.msk [vmem:[#allocation2 + $0x18] sm:$0xff] %vm354_vm2, %v1548_v13  ;;  %1329 = vset.pattern.permute.xlu0 %v1549_v34  ;;  %1330 = vset.pattern.permute.xlu1 %v1549_v34  ;;  %v376_v51 = vld [vmem:[%s293_s21] sm:$0xf]  ;;  %v377_v53 = vld [vmem:[%s293_s21 + $0x4] sm:$0xf] }
  0x80   : > { %359 = vst.msk [vmem:[#allocation3] sm:$0xff] %vm354_vm2, %v1546_v0  ;;  %360 = vst.msk [vmem:[#allocation3 + $0x8] sm:$0xff] %vm354_vm2, %v1546_v0  ;;  %v695_v52 = vsel %vm693_vm3, %v376_v51, 0  ;;  %v741_v54 = vsel %vm693_vm3, %v377_v53, 0  ;;  %v378_v55 = vld [vmem:[%s293_s21 + $0x8] sm:$0xf] }
  0x81   : > { %361 = vst.msk [vmem:[#allocation3 + $0x10] sm:$0xff] %vm354_vm2, %v1546_v0  ;;  %362 = vst.msk [vmem:[#allocation3 + $0x18] sm:$0xff] %vm354_vm2, %v1546_v0  ;;  %v787_v56 = vsel %vm693_vm3, %v378_v55, 0  ;;  %v379_v57 = vld [vmem:[%s293_s21 + $0xc] sm:$0xf]  ;;  %p341_p0 = scmp.lt.s32.totalorder %s1166_s27, 7 }
  0x82   : > { %v833_v58 = vsel %vm693_vm3, %v379_v57, 0  ;;  %s1165_s7 = sshll.u32 %s1788_s25, 5  ;;  %s1184_s12 = sshll.u32 %s1531_s18, 9 }
  0x83   : > { %1204 = vmatmul.mubr.msk.bf16.vlgmr.msra.gmra.mrb[0].mxu0 %vm363_vm0, %v368_v7  ;;  %1210 = vmatmul.mubr.msk.bf16.vlgmr.msra.gmra.mrb[0].mxu1 %vm363_vm0, %v369_v8  ;;  %s2066_s27 = smov (!%p341_p0, %s1166_s27), 7  ;;  %s325_s11 = scalar_lea.vmem [#allocation11], %s1165_s7 }
  0x84   : > { %1214 = vmatpush3.bf16.xpose.msra.mxu0 %v477_v9  ;;  %1220 = vmatpush3.bf16.xpose.msra.mxu1 %v523_v10  ;;  %s1167_s19 = sshll.u32 %s2066_s27, 3  ;;  %s977_s20 = sshll.u32 %s325_s11, 4  ;;  %s1967_s20 = int_to_ptr.vmem [resolvable:$true] %s977_s20 }
  0x85   : > { %1215 = vmatprep.mubr.msk.bf16.mxu0 %vm1547_vm1, %v1546_v0  ;;  %1221 = vmatprep.mubr.msk.bf16.mxu1 %vm1547_vm1, %v1546_v0  ;;  %v1873_v35 = vld [vmem:[#allocation2] sm:$0xff]  ;;  %v1878_v38 = vld [vmem:[#allocation2 + $0x8] sm:$0xff]  ;;  %s347_s5 = scalar_lea.vmem %s2021_s4, %s1167_s19  ;;  %s1965_s6 = scalar_lea.hbm %s2020_s3, %s1184_s12 }
  0x86   : > { %1225 = vmatprep.subr.bf16.mxu0 %v1546_v0  ;;  %1231 = vmatprep.subr.bf16.mxu1 %v1546_v0  ;;  %v1888_v42 = vld [vmem:[#allocation2 + $0x10] sm:$0xff]  ;;  %v1898_v46 = vld [vmem:[#allocation2 + $0x18] sm:$0xff]  ;;  %s955_s10 = scalar_lea.sflag [#allocation7], %s1788_s25  ;;  %s1453_s18 = scalar_lea.vmem %s1967_s20, 512 }
  0x87   : > { %p1454_p10 = scmp.ne.s32.totalorder %s1967_s20, %s1453_s18  ;;  %p2053_p8 = scmp.ne.s32.totalorder %s2039_s28, 0 }
  0x88   : > { %v631_v34 = vld [vmem:[#allocation3 + $0x10] sm:$0xff]  ;;  %s1550_s14 = smov [#allocation11]  }
  0x89   : > { %p1455_p9 = pnand %p1454_p10, %p2053_p8  ;;  %s1457_s8 = sshll.u32 %s1550_s14, 4  ;;  %s1458_s8 = int_to_ptr.vmem [resolvable:$false] %s1457_s8 }
  0x8a   : > { %s1459_s26 = scalar_lea.vmem %s1458_s8, 1024  ;;  %p1460_p1 = scmp.lt.s32.totalorder %s1967_s20, %s1458_s8 }
  0x8b   : > { %1216 = vmatmul.mubr.msk.bf16.vlgmr.msra.gmra.mrb[4].mxu0 %vm363_vm0, %v370_v11  ;;  %1222 = vmatmul.mubr.msk.bf16.vlgmr.msra.gmra.mrb[4].mxu1 %vm363_vm0, %v371_v12  ;;  %p1456_p12 = pneg %p1455_p9  ;;  %p1461_p6 = scmp.lt.s32.totalorder %s1459_s26, %s1453_s18 }
  0x8c   : > { %1227 = vmatprep.mubr.msk.bf16.mxu0 %vm1547_vm1, %v1546_v0  ;;  %1233 = vmatprep.mubr.msk.bf16.mxu1 %vm1547_vm1, %v1546_v0 }
  0x8d   : > { %1226 = vmatpush3.bf16.msra.mxu0 %v695_v52  ;;  %1232 = vmatpush3.bf16.msra.mxu1 %v741_v54  ;;  %p1462_p13 = por %p1461_p6, %p1460_p1 }
  0x8e   : > { %1237 = vmatprep.subr.bf16.mxu0 %v1546_v0  ;;  %1243 = vmatprep.subr.bf16.mxu1 %v1546_v0 }
  0x8f   : > { %p1463_p11 = pnand %p1462_p13, %p1456_p12 }
 0x156   : > { %v1857_v14 = vpop.f32.mrb[0].mxu0  ;;  %v1859_v15 = vpop.f32.mrb[0].mxu1 }
 0x157   : > { %v1205_v16 = vpop.f32.mrb[1].mxu0  ;;  %v569_v17 = vsel %vm363_vm0, %v1857_v14, -inf  ;;  %v1211_v18 = vpop.f32.mrb[1].mxu1  ;;  %v572_v23 = vsel %vm363_vm0, %v1859_v15, -inf }
 0x158   : > { %570 = vmax.xlane.f32.xlu0 %v569_v17  ;;  %v424_v19 = vpop.f32.mrb[2].mxu0  ;;  %v470_v20 = vpop.f32.mrb[2].mxu1 }
 0x159   : > { %v1206_v21 = vpop.f32.mrb[3].mxu0  ;;  %v1212_v22 = vpop.f32.mrb[3].mxu1 }
 0x15c   : > { %573 = vmax.xlane.f32.xlu0 %v572_v23 }
 0x15e   : > { %v1865_v24 = vpop.f32.mrb[4].mxu0  ;;  %v1867_v25 = vpop.f32.mrb[4].mxu1 }
 0x15f   : > { %v1217_v26 = vpop.f32.mrb[5].mxu0  ;;  %v575_v27 = vsel %vm363_vm0, %v1865_v24, -inf  ;;  %v1223_v28 = vpop.f32.mrb[5].mxu1  ;;  %v578_v33 = vsel %vm363_vm0, %v1867_v25, -inf }
 0x160   : > { %576 = vmax.xlane.f32.xlu1 %v575_v27  ;;  %v516_v29 = vpop.f32.mrb[6].mxu0  ;;  %v562_v30 = vpop.f32.mrb[6].mxu1  ;;  %v629_v27 = vld [vmem:[#allocation3] sm:$0xff] }
 0x161   : > { %v1218_v31 = vpop.f32.mrb[7].mxu0  ;;  %v1224_v32 = vpop.f32.mrb[7].mxu1  ;;  %v630_v30 = vld [vmem:[#allocation3 + $0x8] sm:$0xff] }
 0x164   : > { %579 = vmax.xlane.f32.xlu1 %v578_v33 }
 0x1e5   : > { %v571_v36 = vpop.xlane.xlu0 %570 }
 0x1e6   : > { %v1876_v37 = vmax.f32 %v1873_v35, %v571_v36 }
 0x1e8   : > { %v585_v39 = vsub.f32 %v1873_v35, %v1876_v37  ;;  %883 = vst.msk [vmem:[#allocation2] sm:$0xff] %vm354_vm2, %v1876_v37  ;;  %599 = vperm.xlu0 %1329, %v1876_v37  }
 0x1e9   : > { %v574_v40 = vpop.xlane.xlu0 %573 }
 0x1ea   : > { %v1886_v41 = vmax.f32 %v1878_v38, %v574_v40 }
 0x1ec   : > { %v586_v43 = vsub.f32 %v1878_v38, %v1886_v41  ;;  %884 = vst.msk [vmem:[#allocation2 + $0x8] sm:$0xff] %vm354_vm2, %v1886_v41  ;;  %604 = vperm.xlu1 %1330, %v1886_v41   ;;  %v632_v38 = vld [vmem:[#allocation3 + $0x18] sm:$0xff] }
 0x1ed   : > { %v577_v44 = vpop.xlane.xlu1 %576 }
 0x1ee   : > { %v1896_v45 = vmax.f32 %v1888_v42, %v577_v44  ;;  %v591_v18 = vmul.f32 1.442695, %v586_v43 }
 0x1f0   : > { %v587_v47 = vsub.f32 %v1888_v42, %v1896_v45  ;;  %885 = vst.msk [vmem:[#allocation2 + $0x10] sm:$0xff] %vm354_vm2, %v1896_v45  ;;  %609 = vperm.xlu1 %1330, %v1896_v45  }
 0x1f1   : > { %v580_v48 = vpop.xlane.xlu1 %579 }
 0x1f2   : > { %v1906_v49 = vmax.f32 %v1898_v46, %v580_v48  ;;  %v593_v21 = vmul.f32 1.442695, %v587_v47 }
 0x1f3   : > { %v931_v53 = vld [vmem:[#allocation2 + $0x8] sm:$0xff] }
 0x1f4   : > { %v588_v50 = vsub.f32 %v1898_v46, %v1906_v49  ;;  %886 = vst.msk [vmem:[#allocation2 + $0x18] sm:$0xff] %vm354_vm2, %v1906_v49  ;;  %614 = vperm.xlu1 %1330, %v1906_v49   ;;  %v930_v49 = vld [vmem:[#allocation2] sm:$0xff] }
 0x1f6   : > { %v595_v22 = vmul.f32 1.442695, %v588_v50 }
 0x1f7   : > { %v932_v57 = vld [vmem:[#allocation2 + $0x10] sm:$0xff] }
 0x267   : > { %v600_v59 = vpop.permute.xlu0 %599 }
 0x268   : > { %v617_v60 = vsub.f32 %v1857_v14, %v600_v59 }
 0x26a   : > { %v621_v61 = vmul.f32 1.442695, %v617_v60 }
 0x26b   : > { %v605_v62 = vpop.permute.xlu1 %604 }
 0x26c   : > { %1331 = vpow2.f32 %v621_v61  ;;  %v618_v63 = vsub.f32 %v1859_v15, %v605_v62  ;;  %v933_v61 = vld [vmem:[#allocation2 + $0x18] sm:$0xff] }
 0x26e   : > { %v623_v1 = vmul.f32 1.442695, %v618_v63  ;;  %v658_v63 = vld [vmem:[#allocation4] sm:$0xff] }
 0x26f   : > { %v610_v2 = vpop.permute.xlu1 %609 }
 0x270   : > { %1333 = vpow2.f32 %v623_v1  ;;  %v619_v3 = vsub.f32 %v1865_v24, %v610_v2 }
 0x272   : > { %v625_v4 = vmul.f32 1.442695, %v619_v3  ;;  %v659_v3 = vld [vmem:[#allocation4 + $0x8] sm:$0xff] }
 0x273   : > { %v615_v5 = vpop.permute.xlu1 %614 }
 0x274   : > { %1335 = vpow2.f32 %v625_v4  ;;  %v620_v6 = vsub.f32 %v1867_v25, %v615_v5 }
 0x276   : > { %v1332_v7 = vpop.eup %1331  ;;  %v627_v8 = vmul.f32 1.442695, %v620_v6 }
 0x277   : > { %v637_v9 = vsel %vm363_vm0, %v1332_v7, 0.0  ;;  %v686_v10 = vpack.c.bf16 %v1332_v7, %v1332_v7 }
 0x278   : > { %1337 = vpow2.f32 %v627_v8  ;;  %638 = vadd.xlane.f32.xlu1 %v637_v9 }
 0x279   : > { %1228 = vmatmul.mubr.msk.bf16.vlgmr.msra.gmra.mrb[8].mxu0 %vm363_vm0, %v686_v10  ;;  %1339 = vpow2.f32 %v591_v18 }
 0x27a   : > { %v1334_v11 = vpop.eup %1333  ;;  %1238 = vmatpush3.bf16.msra.mxu0 %v787_v56  ;;  %1239 = vmatprep.mubr.msk.bf16.mxu0 %vm1547_vm1, %v1546_v0 }
 0x27b   : > { %v640_v12 = vsel %vm363_vm0, %v1334_v11, 0.0  ;;  %v687_v13 = vpack.c.bf16 %v1334_v11, %v1334_v11 }
 0x27c   : > { %641 = vadd.xlane.f32.xlu0 %v640_v12  ;;  %v660_v12 = vld [vmem:[#allocation4 + $0x10] sm:$0xff] }
 0x27d   : > { %1234 = vmatmul.mubr.msk.bf16.vlgmr.msra.gmra.mrb[8].mxu1 %vm363_vm0, %v687_v13 }
 0x27e   : > { %v1336_v14 = vpop.eup %1335  ;;  %1244 = vmatpush3.bf16.msra.mxu1 %v833_v58  ;;  %1245 = vmatprep.mubr.msk.bf16.mxu1 %vm1547_vm1, %v1546_v0  ;;  %v589_v0 = vmul.f32 1.442695, %v585_v39 }
 0x27f   : > { %v643_v15 = vsel %vm363_vm0, %v1336_v14, 0.0  ;;  %v688_v16 = vpack.c.bf16 %v1336_v14, %v1336_v14 }
 0x280   : > { %644 = vadd.xlane.f32.xlu1 %v643_v15  ;;  %1341 = vpow2.f32 %v589_v0 }
 0x281   : > { %1240 = vmatmul.mubr.msk.bf16.vlgmr.msra.gmra.mrb[12].mxu0 %vm363_vm0, %v688_v16  ;;  %1343 = vpow2.f32 %v593_v21 }
 0x282   : > { %v1338_v17 = vpop.eup %1337  ;;  %1345 = vpow2.f32 %v595_v22 }
 0x283   : > { %v646_v19 = vsel %vm363_vm0, %v1338_v17, 0.0  ;;  %v689_v20 = vpack.c.bf16 %v1338_v17, %v1338_v17  ;;  %v1340_v23 = vpop.eup %1339 }
 0x284   : > { %647 = vadd.xlane.f32.xlu1 %v646_v19  ;;  %v634_v32 = vmul.f32 %v1340_v23, %v630_v30  ;;  %v661_v19 = vld [vmem:[#allocation4 + $0x18] sm:$0xff] }
 0x285   : > { %1246 = vmatmul.mubr.msk.bf16.vlgmr.msra.gmra.mrb[12].mxu1 %vm363_vm0, %v689_v20 }
 0x28a   : > { %v1342_v24 = vpop.eup %1341 }
 0x28b   : > { %v1344_v25 = vpop.eup %1343  ;;  %v633_v28 = vmul.f32 %v1342_v24, %v629_v27 }
 0x28c   : > { %v1346_v26 = vpop.eup %1345  ;;  %v635_v36 = vmul.f32 %v1344_v25, %v631_v34 }
 0x28d   : > { %v636_v41 = vmul.f32 %v1346_v26, %v632_v38 }
 0x292   : > { %669 = vperm.xlu0 %1329, %v1340_v23  }
 0x295   : > { %664 = vperm.xlu1 %1330, %v1342_v24  }
 0x299   : > { %674 = vperm.xlu1 %1330, %v1344_v25  }
 0x29d   : > { %679 = vperm.xlu1 %1330, %v1346_v26  }
 0x305   : > { %v639_v29 = vpop.xlane.xlu1 %638 }
 0x306   : > { %v649_v31 = vadd.f32 %v639_v29, %v633_v28 }
 0x308   : > { %654 = vst.msk [vmem:[#allocation3] sm:$0xff] %vm354_vm2, %v649_v31 }
 0x309   : > { %v642_v33 = vpop.xlane.xlu0 %641 }
 0x30a   : > { %v650_v35 = vadd.f32 %v642_v33, %v634_v32 }
 0x30c   : > { %655 = vst.msk [vmem:[#allocation3 + $0x8] sm:$0xff] %vm354_vm2, %v650_v35 }
 0x30d   : > { %v645_v37 = vpop.xlane.xlu1 %644 }
 0x30e   : > { %v651_v39 = vadd.f32 %v645_v37, %v635_v36 }
 0x30f   : > { %v934_v40 = vld [vmem:[#allocation3] sm:$0xff] }
 0x310   : > { %1347 = vlog2.f32 %v934_v40  ;;  %656 = vst.msk [vmem:[#allocation3 + $0x10] sm:$0xff] %vm354_vm2, %v651_v39  ;;  %900 = vperm.xlu1 %1330, %v934_v40  }
 0x311   : > { %v648_v42 = vpop.xlane.xlu1 %647  ;;  %v670_v4 = vpop.permute.xlu0 %669 }
 0x312   : > { %v652_v43 = vadd.f32 %v648_v42, %v636_v41  ;;  %v683_v10 = vmul.f32 %v670_v4, %v659_v3 }
 0x313   : > { %v935_v44 = vld [vmem:[#allocation3 + $0x8] sm:$0xff] }
 0x314   : > { %1349 = vlog2.f32 %v935_v44  ;;  %657 = vst.msk [vmem:[#allocation3 + $0x18] sm:$0xff] %vm354_vm2, %v652_v43  ;;  %905 = vperm.xlu0 %1329, %v935_v44  }
 0x315   : > { %v665_v1 = vpop.permute.xlu1 %664 }
 0x316   : > { %v682_v2 = vmul.f32 %v665_v1, %v658_v63 }
 0x317   : > { %v936_v45 = vld [vmem:[#allocation3 + $0x10] sm:$0xff] }
 0x318   : > { %1351 = vlog2.f32 %v936_v45  ;;  %910 = vperm.xlu1 %1330, %v936_v45  }
 0x319   : > { %v675_v8 = vpop.permute.xlu1 %674 }
 0x31a   : > { %v1348_v46 = vpop.eup %1347  ;;  %v684_v17 = vmul.f32 %v675_v8, %v660_v12 }
 0x31b   : > { %v939_v47 = vmul.f32 0.6931472, %v1348_v46  ;;  %v937_v48 = vld [vmem:[#allocation3 + $0x18] sm:$0xff] }
 0x31c   : > { %1353 = vlog2.f32 %v937_v48  ;;  %915 = vperm.xlu0 %1329, %v937_v48  }
 0x31d   : > { %v946_v50 = vadd.f32 %v939_v47, %v930_v49  ;;  %v680_v20 = vpop.permute.xlu1 %679 }
 0x31e   : > { %v1350_v51 = vpop.eup %1349  ;;  %v685_v24 = vmul.f32 %v680_v20, %v661_v19 }
 0x31f   : > { %950 = vst.msk [vmem:[%s347_s5] sm:$0xff] %vm354_vm2, %v946_v50  ;;  %v941_v52 = vmul.f32 0.6931472, %v1350_v51 }
 0x321   : > { %v947_v54 = vadd.f32 %v941_v52, %v931_v53 }
 0x322   : > { %v1352_v55 = vpop.eup %1351 }
 0x323   : > { %951 = vst.msk [vmem:[%s347_s5 + $0x8] sm:$0xff] %vm354_vm2, %v947_v54  ;;  %v943_v56 = vmul.f32 0.6931472, %v1352_v55 }
 0x325   : > { %v948_v58 = vadd.f32 %v943_v56, %v932_v57 }
 0x326   : > { %v1354_v59 = vpop.eup %1353 }
 0x327   : > { %952 = vst.msk [vmem:[%s347_s5 + $0x10] sm:$0xff] %vm354_vm2, %v948_v58  ;;  %v945_v60 = vmul.f32 0.6931472, %v1354_v59 }
 0x329   : > { %v949_v62 = vadd.f32 %v945_v60, %v933_v61 }
 0x32b   : > { %953 = vst.msk [vmem:[%s347_s5 + $0x18] sm:$0xff] %vm354_vm2, %v949_v62 }
 0x34c   : > { %v731_v5 = vpop.f32.mrb[8].mxu0 }
 0x34d   : > { %v875_v6 = vadd.f32 %v731_v5, %v682_v2  ;;  %v1229_v7 = vpop.f32.mrb[9].mxu0 }
 0x34e   : > { %v734_v9 = vpop.f32.mrb[10].mxu0 }
 0x34f   : > { %879 = vst.msk [vmem:[#allocation4] sm:$0xff] %vm363_vm0, %v875_v6  ;;  %v1230_v11 = vpop.f32.mrb[11].mxu0 }
 0x350   : > { %v777_v13 = vpop.f32.mrb[8].mxu1 }
 0x351   : > { %v876_v14 = vadd.f32 %v777_v13, %v683_v10  ;;  %v1235_v15 = vpop.f32.mrb[9].mxu1 }
 0x352   : > { %v780_v16 = vpop.f32.mrb[10].mxu1 }
 0x353   : > { %880 = vst.msk [vmem:[#allocation4 + $0x8] sm:$0xff] %vm363_vm0, %v876_v14  ;;  %v1236_v18 = vpop.f32.mrb[11].mxu1 }
 0x354   : > { %v823_v0 = vpop.f32.mrb[12].mxu0 }
 0x355   : > { %v877_v21 = vadd.f32 %v823_v0, %v684_v17  ;;  %v1241_v22 = vpop.f32.mrb[13].mxu0 }
 0x356   : > { %v826_v23 = vpop.f32.mrb[14].mxu0  ;;  %v890_v35 = vld [vmem:[#allocation4] sm:$0xff] }
 0x357   : > { %881 = vst.msk [vmem:[#allocation4 + $0x10] sm:$0xff] %vm363_vm0, %v877_v21  ;;  %v1242_v25 = vpop.f32.mrb[15].mxu0 }
 0x358   : > { %v869_v26 = vpop.f32.mrb[12].mxu1 }
 0x359   : > { %v878_v27 = vadd.f32 %v869_v26, %v685_v24  ;;  %v1247_v28 = vpop.f32.mrb[13].mxu1 }
 0x35a   : > { %v872_v29 = vpop.f32.mrb[14].mxu1  ;;  %v891_v39 = vld [vmem:[#allocation4 + $0x8] sm:$0xff] }
 0x35b   : > { %882 = vst.msk [vmem:[#allocation4 + $0x18] sm:$0xff] %vm363_vm0, %v878_v27  ;;  %v1248_v30 = vpop.f32.mrb[15].mxu1 }
 0x35e   : > { %v892_v42 = vld [vmem:[#allocation4 + $0x10] sm:$0xff] }
 0x362   : > { %v893_v45 = vld [vmem:[#allocation4 + $0x18] sm:$0xff] }
 0x38f   : > { %v901_v31 = vpop.permute.xlu1 %900 }
 0x390   : > { %1355 = vrcp.f32 %v901_v31 }
 0x393   : > { %v906_v32 = vpop.permute.xlu0 %905 }
 0x394   : > { %1357 = vrcp.f32 %v906_v32 }
 0x397   : > { %v911_v33 = vpop.permute.xlu1 %910 }
 0x398   : > { %1359 = vrcp.f32 %v911_v33 }
 0x39a   : > { %v1356_v34 = vpop.eup %1355 }
 0x39b   : > { %v919_v36 = vmul.f32 %v1356_v34, %v890_v35  ;;  %v916_v37 = vpop.permute.xlu0 %915 }
 0x39c   : > { %1361 = vrcp.f32 %v916_v37 }
 0x39d   : > { %926 = vst.msk [vmem:[%s325_s11] sm:$0xff] %vm363_vm0, %v919_v36 }
 0x39e   : > { %v1358_v38 = vpop.eup %1357 }
 0x39f   : > { %v921_v40 = vmul.f32 %v1358_v38, %v891_v39 }
 0x3a1   : > { %927 = vst.msk [vmem:[%s325_s11 + $0x8] sm:$0xff] %vm363_vm0, %v921_v40 }
 0x3a2   : > { %v1360_v41 = vpop.eup %1359 }
 0x3a3   : > { %v923_v43 = vmul.f32 %v1360_v41, %v892_v42 }
 0x3a5   : > { %928 = vst.msk [vmem:[%s325_s11 + $0x10] sm:$0xff] %vm363_vm0, %v923_v43 }
 0x3a6   : > { %v1362_v44 = vpop.eup %1361 }
 0x3a7   : > { %v925_v46 = vmul.f32 %v1362_v44, %v893_v45 }
 0x3a9   : > { %929 = vst.msk [vmem:[%s325_s11 + $0x18] sm:$0xff] %vm363_vm0, %v925_v46 }
 0x3aa   : > { %1466 = shalt.err (!%p1463_p11)
}
 0x3ab   : > { %s1467_s22 = scalar_lea.hbm %s1965_s6, 512  ;;  %s1471_s21 = scalar_lea.hbm %s2020_s3, 1024 }
 0x3ac   : > { %p1468_p2 = scmp.ne.s32.totalorder %s1965_s6, %s1467_s22  ;;  %p1472_p4 = scmp.lt.u32.totalorder %s1965_s6, %s2020_s3 }
 0x3ad   : > { %p1473_p3 = scmp.lt.u32.totalorder %s1471_s21, %s1467_s22  ;;  %p1475_p10 = scmp.lt.u32.totalorder %s1467_s22, %s1965_s6 }
 0x3ae   : > { %p1469_p5 = pnand %p1468_p2, %p2053_p8 }
 0x3af   : > { %p1474_p0 = por %p1473_p3, %p1472_p4 }
 0x3b0   : > { %p1470_p7 = pneg %p1469_p5 }
 0x3b1   : > { %p1476_p9 = por %p1475_p10, %p1474_p0 }
 0x3b3   : > { %p1477_p12 = pnand %p1476_p9, %p1470_p7 }
 0x3b5   : > { %1480 = shalt.err (!%p1477_p12)
}
 0x3b6   : > { %s1551_s29 = smov 128   ;;  %s1552_s9 = smov 8  }
 0x3b7   : > { %1255 = dma.vmem_to_hbm [thread:$0]  (%p2053_p8), %s1967_s20, 512, %s1965_s6, %s955_s10, %s1551_s29, %s1551_s29, %s1552_s9  }
 0x3b8 PF: > { %s2054_s5 = sld [smem:[#allocation16_spill]]  ;;  %s996_s7 = sand.u32 1, %s1519_s15  }
 0x3b9   : > { %p2055_p1 = scmp.ne.s32.totalorder %s2041_s30, 0  ;;  %s997_s11 = scalar_lea.sflag [#allocation7], %s996_s7 }
 0x3be   : > { %p2056_p6 = scmp.ge.s32.totalorder %s2054_s5, 2 }
 0x3c0   : > { %p1268_p13 = pnand %p2056_p6, %p2055_p1 }
 0x3c2   : > { %1514 = dma.done.wait (!%p1268_p13), %s997_s11, 512  }
 0x3c3   : > { %1516 = vsyncadd (!%p1268_p13), %s997_s11, 4294966784  ;;  %s24_s20 = sadd.s32 1, %s2054_s5   ;;  %s2057_s12 = sld [smem:[#allocation18_spill]] }
 0x3c4   : > { %p21_p11 = scmp.ge.s32.totalorder %s24_s20, 4   ;;  %s2058_s18 = sld [smem:[#allocation15_spill]] }
 0x3c5   : > { %s2059_s19 = sld [smem:[#allocation17_spill]]  ;;  %s2060_s15 = smov %s1523_s16 }
 0x3c6   : > { %s2061_s16 = smov %s1527_s17  ;;  %23 = sbr.rel (!%p21_p11) target bundleno = 10 (0xa), region = 121 }
 0x3c9   : > { %s2062_s17 = smov %s2057_s12 }
 0x3cd   :  { %1013 = vsyncpa [#allocation6], 1 }
 0x3ce   :  { %1015 = vsyncpa [#allocation6 + $0x1], 1 }
 0x3cf   :  { %1016 = vsyncpa [#allocation9], 1 }
 0x3d0   :  { %1018 = vsyncpa [#allocation9 + $0x1], 1 }
 0x3d1   :  { %1019 = vsyncpa [#allocation7], 1 }
 0x3d2   :  { %1021 = vsyncpa [#allocation7 + $0x1], 1 }

</bundles_post_ra>
